<compile_context>
chip_gen: v5e
topology: v5e:2x2
jax: 0.10.0
libtpu: 0.0.40
codegen_flags: <defaults>
</compile_context>

<pallas_src>
import math

import jax
import jax.numpy as jnp
from jax import lax
from jax.experimental import pallas as pl
from jax.experimental.pallas import tpu as pltpu

EPS = 1e-12
LANES = 128            # full vreg lane width
MAX_BLOCK_ROWS = 8192  # 8192 x 128 f32 = 4 MiB tile (8 MiB double-buffered)
NUM_CORES = 2          # "parallel" leading axis: both TCs on v7x; ~free on v5e/v6e


def _exact_2d_view(shape):
    """(rows, lanes) with rows * lanes == prod(shape): a pure (copy-free) reshape."""
    total = math.prod(shape)
    if total % LANES == 0:
        return total // LANES, LANES          # lane-dense fast path
    # Exact fallback: fold trailing dims into the lane axis (block then uses the
    # full lane extent, which the Mosaic (8,128) rule allows).
    lanes = shape[-1]
    folded = 1
    for d in reversed(shape[1:]):
        folded *= d
        if folded > 2048:
            break
        lanes = folded
    return total // lanes, lanes


def _make_entropy_kernel(block_rows, lanes, blocks_per_core, valid_rows,
                         needs_mask, eps):
    def kernel(x_ref, out_ref, acc_ref):
        core = pl.program_id(0)
        step = pl.program_id(1)

        @pl.when(step == 0)
        def _init():
            acc_ref[...] = jnp.zeros_like(acc_ref)

        x = x_ref[...].astype(jnp.float32)       # f32 accumulation (input may be bf16)

        if needs_mask:
            # Ragged edge / clamped-duplicate blocks: zero rows whose *logical*
            # row index is out of range.  Pure VPU work (iota + cmp + select),
            # hidden under the VALU slack of a memory-bound loop; skipped at
            # trace time when the grid divides evenly.
            blk = core * blocks_per_core + step              # logical block id
            row0 = blk * block_rows
            row_ids = row0 + lax.broadcasted_iota(jnp.int32, (block_rows, 1), 0)
            x = jnp.where(row_ids < valid_rows, x, 0.0)      # 0*log(0+eps) == 0 exactly

        b = x * jnp.log(x + eps)                 # log -> EUP slot, mul -> VPU
        # Deferred reduction: fold sublane groups with plain vector adds (VPU),
        # no per-step XLU tree reduce and no serial (1,1) read-modify-write.
        acc_ref[...] += jnp.sum(b.reshape(-1, 8, lanes), axis=0)

        @pl.when(step == pl.num_programs(1) - 1)
        def _flush():
            out_ref[...] = acc_ref[...]          # per-core (8, lanes) partial slab

    return kernel


def entropy_loss_encap(x, *, eps=EPS, max_block_rows=MAX_BLOCK_ROWS):
    """EntropyLossEncap.forward for a channels-first feature map.

    x: array of rank >= 2 with channels at axis 1 (e.g. NCHW attention maps),
       float32 or bfloat16 (bf16 halves HBM traffic; accumulation is f32).
    Returns a scalar float32 loss.
    """
    channels = x.shape[1]
    total = math.prod(x.shape)
    num_rows = total // channels                 # rows of the permuted (-1, C) view

    rows, lanes = _exact_2d_view(x.shape)
    x2d = x.reshape(rows, lanes)                 # reshape of contiguous buffer: no HBM copy

    block_rows = min(max_block_rows, 8 * pl.cdiv(rows, 8))   # multiple of 8 sublanes
    blocks_total = pl.cdiv(rows, block_rows)
    blocks_per_core = pl.cdiv(blocks_total, NUM_CORES)
    needs_mask = (rows % block_rows != 0) or (blocks_total % NUM_CORES != 0)

    def in_index_map(core, step):
        # Clamp so an overhanging core never DMAs past the array extent; the
        # kernel masks by the *logical* block id, so duplicates contribute 0.
        return (jnp.minimum(core * blocks_per_core + step, blocks_total - 1), 0)

    kernel = _make_entropy_kernel(block_rows, lanes, blocks_per_core, rows,
                                  needs_mask, eps)

    partials = pl.pallas_call(
        kernel,
        out_shape=jax.ShapeDtypeStruct((NUM_CORES * 8, lanes), jnp.float32),
        grid_spec=pltpu.PrefetchScalarGridSpec(
            num_scalar_prefetch=0,
            grid=(NUM_CORES, blocks_per_core),
            in_specs=[pl.BlockSpec((block_rows, lanes), in_index_map)],
            out_specs=pl.BlockSpec((8, lanes), lambda core, step: (core, 0)),
            scratch_shapes=[pltpu.VMEM((8, lanes), jnp.float32)],
        ),
        compiler_params=pltpu.CompilerParams(
            # Core axis parallel (2 TCs on v7x); the row-block axis carries the
            # resident accumulator, so it must stay "arbitrary".
            dimension_semantics=("parallel", "arbitrary"),
        ),
    )(x2d)

    # Tiny final reduce (NUM_CORES*8 x lanes) + scale in plain XLA.
    total_b = jnp.sum(partials)
    return (-total_b / jnp.float32(num_rows)).astype(jnp.float32)


def _entropy_loss_ref(x, eps=EPS):
    # Pure-JAX reference mirroring the PyTorch module exactly (with permute).
    c = x.shape[1]
    perm = (0,) + tuple(range(2, x.ndim)) + (1,)
    score = jnp.transpose(x, perm).reshape(-1, c)
    b = score * jnp.log(score + eps)
    return jnp.mean(-jnp.sum(b, axis=1))


if __name__ == "__main__":
    # Small deterministic example: NCHW attention map with probabilities over C
    # (the typical input to EntropyLossEncap in MemAE).
    N, C, H, W = 2, 4, 16, 16
    key = jax.random.PRNGKey(0)
    logits = jax.random.normal(key, (N, C, H, W), dtype=jnp.float32)
    x = jax.nn.softmax(logits, axis=1)           # channel-wise probability map

    loss = entropy_loss_encap(x)
    loss = jax.block_until_ready(loss)

    ref = _entropy_loss_ref(x)
    assert loss.shape == ()
    assert jnp.abs(loss - ref) <= 1e-4 * (1.0 + jnp.abs(ref)), (loss, ref)
    print("KERNEL_OK")
</pallas_src>

<mosaic_0001>
module attributes {stable_mosaic.version = 11 : i64} {
  func.func @kernel(%arg0: i32, %arg1: i32, %arg2: memref<16x128xf32, #tpu.memory_space<vmem>>, %arg3: memref<8x128xf32, #tpu.memory_space<vmem>>, %arg4: memref<8x128xf32, #tpu.memory_space<vmem>>) attributes {dimension_semantics = [#tpu.dimension_semantics<parallel>, #tpu.dimension_semantics<arbitrary>], iteration_bounds = array<i64: 2, 1>, scalar_prefetch = 0 : i64, scratch_operands = 1 : i64, tpu.core_type = #tpu.core_type<tc>, window_params = [{transform_indices = @transform_0, window_bounds = array<i64: 16, 128>}, {transform_indices = @transform_1, window_bounds = array<i64: 8, 128>}]} {
    %c0_i32 = arith.constant 0 : i32
    %0 = arith.cmpi eq, %arg1, %c0_i32 : i32
    %1 = arith.extui %0 : i1 to i32
    %c0_i32_0 = arith.constant 0 : i32
    %2 = arith.cmpi ne, %1, %c0_i32_0 : i32
    scf.if %2 {
      %cst_11 = arith.constant 0.000000e+00 : f32
      %28 = vector.broadcast %cst_11 : f32 to vector<8x128xf32>
      %c0_12 = arith.constant 0 : index
      %c0_13 = arith.constant 0 : index
      %29 = vector.load %arg4[%c0_12, %c0_13] : memref<8x128xf32, #tpu.memory_space<vmem>>, vector<8x128xf32>
      tpu.vector_store %arg4[%c0_12, %c0_13], %28 {strides = array<i32>} : memref<8x128xf32, #tpu.memory_space<vmem>>, vector<8x128xf32>,
    } else {
    }
    %c0 = arith.constant 0 : index
    %c0_1 = arith.constant 0 : index
    %3 = vector.load %arg2[%c0, %c0_1] : memref<16x128xf32, #tpu.memory_space<vmem>>, vector<16x128xf32>
    %c1_i32 = arith.constant 1 : i32
    %4 = arith.muli %arg0, %c1_i32 : i32
    %5 = arith.addi %4, %arg1 : i32
    %c16_i32 = arith.constant 16 : i32
    %6 = arith.muli %5, %c16_i32 : i32
    %7 = tpu.iota {dimensions = array<i32: 0>} : vector<16x1xi32>
    %8 = vector.broadcast %6 : i32 to vector<16x1xi32>
    %9 = arith.addi %8, %7 : vector<16x1xi32>
    %c16_i32_2 = arith.constant 16 : i32
    %10 = vector.broadcast %c16_i32_2 : i32 to vector<16x1xi32>
    %11 = arith.cmpi slt, %9, %10 : vector<16x1xi32>
    %cst = arith.constant 0.000000e+00 : f32
    %12 = vector.shape_cast %11 : vector<16x1xi1> to vector<16x1xi1>
    %13 = vector.broadcast %12 : vector<16x1xi1> to vector<16x128xi1>
    %14 = vector.broadcast %cst : f32 to vector<16x128xf32>
    %15 = arith.select %13, %3, %14 : vector<16x128xi1>, vector<16x128xf32>
    %cst_3 = arith.constant 9.99999996E-13 : f32
    %16 = vector.broadcast %cst_3 : f32 to vector<16x128xf32>
    %17 = arith.addf %15, %16 : vector<16x128xf32>
    %18 = math.log %17 : vector<16x128xf32>
    %19 = arith.mulf %15, %18 : vector<16x128xf32>
    %c0_4 = arith.constant 0 : index
    %c0_5 = arith.constant 0 : index
    %20 = vector.load %arg4[%c0_4, %c0_5] : memref<8x128xf32, #tpu.memory_space<vmem>>, vector<8x128xf32>
    %21 = vector.shape_cast %19 : vector<16x128xf32> to vector<2x8x128xf32>
    %cst_6 = arith.constant dense<0.000000e+00> : vector<8x128xf32>
    %22 = vector.multi_reduction <add>, %21, %cst_6 [0] : vector<2x8x128xf32> to vector<8x128xf32>
    %23 = arith.addf %20, %22 : vector<8x128xf32>
    %c0_7 = arith.constant 0 : index
    %c0_8 = arith.constant 0 : index
    %24 = vector.load %arg4[%c0_7, %c0_8] : memref<8x128xf32, #tpu.memory_space<vmem>>, vector<8x128xf32>
    tpu.vector_store %arg4[%c0_7, %c0_8], %23 {strides = array<i32>} : memref<8x128xf32, #tpu.memory_space<vmem>>, vector<8x128xf32>,
    %c0_i32_9 = arith.constant 0 : i32
    %25 = arith.cmpi eq, %arg1, %c0_i32_9 : i32
    %26 = arith.extui %25 : i1 to i32
    %c0_i32_10 = arith.constant 0 : i32
    %27 = arith.cmpi ne, %26, %c0_i32_10 : i32
    scf.if %27 {
      %c0_11 = arith.constant 0 : index
      %c0_12 = arith.constant 0 : index
      %28 = vector.load %arg4[%c0_11, %c0_12] : memref<8x128xf32, #tpu.memory_space<vmem>>, vector<8x128xf32>
      %c0_13 = arith.constant 0 : index
      %c0_14 = arith.constant 0 : index
      %29 = vector.load %arg3[%c0_13, %c0_14] : memref<8x128xf32, #tpu.memory_space<vmem>>, vector<8x128xf32>
      tpu.vector_store %arg3[%c0_13, %c0_14], %28 {strides = array<i32>} : memref<8x128xf32, #tpu.memory_space<vmem>>, vector<8x128xf32>,
    } else {
    }
    return
  }
  func.func @transform_0(%arg0: i32, %arg1: i32) -> (i32, i32) {
    %c1_i32 = arith.constant 1 : i32
    %0 = arith.muli %arg0, %c1_i32 : i32
    %1 = arith.addi %0, %arg1 : i32
    %c0_i32 = arith.constant 0 : i32
    %2 = arith.minsi %1, %c0_i32 : i32
    %c0_i32_0 = arith.constant 0 : i32
    %c0_i32_1 = arith.constant 0 : i32
    return %2, %c0_i32_0 : i32, i32
  }
  func.func @transform_1(%arg0: i32, %arg1: i32) -> (i32, i32) {
    %c0_i32 = arith.constant 0 : i32
    %c0_i32_0 = arith.constant 0 : i32
    return %arg0, %c0_i32 : i32, i32
  }
}

</mosaic_0001>

<bundles_post_ra>
// kernel: tpu_custom_call.1
= control target key start
LH: loop header
LB: loop body
LE: loop exit
PB: predicated region body
PF: predicated region fallthrough
CT: control target
= control target key end

     0   :  { %6 = vsyncpa [#allocation4], 0  ;;  %s697_s0 = inlined_call_operand.hbm [shape: f32[16,128], index: 0, kind: input, shape index: {}]   ;;  %s698_s1 = inlined_call_operand.hbm [shape: f32[16,128], index: 1, kind: output, shape index: {}]  }
   0x1   :  { %8 = vsyncpa [#allocation4 + $0x1], 0 }
   0x2   :  { %9 = vsyncpa [#allocation5], 0 }
   0x3   :  { %11 = vsyncpa [#allocation5 + $0x1], 0  ;;  %s552_s6 = smov 0   ;;  %s554_s7 = smov 0  }
   0x4   :  { %s556_s8 = smov 0   ;;  %s558_s9 = smov 0  }
   0x5   :  { %s560_s10 = smov 0   ;;  %s562_s11 = smov 0  }
   0x6   :  { %s564_s12 = smov 0   ;;  %s566_s13 = smov 0  }
   0x7 LB: > { %s296_s14 = sadd.s32 4294967295, %s537_s13   ;;  %s297_s15 = sadd.s32 4294967294, %s537_s13   ;;  %s537_s13 = sphi %s566_s13, %s17_s13   ;;  %s533_s12 = sphi %s564_s12, %s709_s12   ;;  %s529_s11 = sphi %s562_s11, %s708_s11   ;;  %s525_s10 = sphi %s560_s10, %s687_s10   ;;  %s521_s9 = sphi %s558_s9, %s707_s9   ;;  %s517_s8 = sphi %s556_s8, %s706_s8   ;;  %s513_s7 = sphi %s554_s7, %s705_s7   ;;  %s509_s6 = sphi %s552_s6, %s704_s6  }
   0x8   : > { %s29_s16 = sadd.s32 1, %s533_s12  ;;  %p506_p1 = scmp.ne.s32.totalorder %s525_s10, 0 }
   0x9   : > { %p31_p0 = scmp.ge.s32.totalorder %s29_s16, 2  ;;  %p50_p2 = scmp.eq.s32.totalorder %s537_s13, 0 }
   0xa   : > { %p55_p3 = scmp.ne.s32.totalorder %s525_s10, %s521_s9  ;;  %p56_p5 = scmp.eq.s32.totalorder %s296_s14, 0 }
   0xb   : > { %s711_s16 = smov (%p31_p0, %s29_s16), 0  ;;  %p598_p4 = por %p506_p1, %p50_p2 }
   0xc   : > { %p602_p6 = por %p56_p5, %p55_p3  ;;  %s65_s19 = ssub.s32 %s533_s12, %s711_s16 }
   0xd   : > { %p66_p7 = scmp.eq.s32.totalorder %s65_s19, 0  ;;  %s68_s20 = sadd.s32 1, %s517_s8 }
   0xe   : > { %p78_p8 = scmp.ne.s32.totalorder %s517_s8, %s513_s7  ;;  %p79_p9 = scmp.eq.s32.totalorder %s296_s14, 1 }
   0xf   : > { %s610_s21 = scalar_select %p66_p7, %s517_s8, %s68_s20  }
  0x10   : > { %p84_p10 = scmp.ne.s32.totalorder %s513_s7, %s509_s6  ;;  %p85_p11 = scmp.eq.s32.totalorder %s297_s15, 1 }
  0x11   : > { %p616_p12 = por %p79_p9, %p78_p8  ;;  %p299_p13 = scmp.ge.s32.totalorder %s537_s13, 2 }
  0x12   : > { %p621_p0 = por %p85_p11, %p84_p10  ;;  %p324_p1 = scmp.lt.s32.totalorder %s537_s13, 2 }
  0x13   : > { %s118_s26 = sshll.u32 %s697_s0, 4  ;;  %s539_s27 = smov [#allocation3]   ;;  %s119_s26 = int_to_ptr.hbm [resolvable:$true] %s118_s26 }
  0x14   : > { %s120_s28 = sshll.u32 %s539_s27, 4  ;;  %p631_p2 = pnand %p324_p1, %p598_p4  ;;  %s121_s28 = int_to_ptr.vmem [resolvable:$true] %s120_s28 }
  0x15   : > { %p303_p3 = scmp.ge.s32.totalorder %s537_s13, 1  ;;  %p128_p5 = scmp.lt.s32.totalorder %s537_s13, 3 }
  0x16   : > { %s404_s30 = sshra.s32 %s119_s26, 4  ;;  %p408_p8 = pneg %p631_p2  ;;  %s405_s30 = int_to_ptr.hbm [resolvable:$true] %s404_s30 }
  0x17   : > { %s406_s2 = scalar_lea.hbm %s405_s30, 16  ;;  %s411_s5 = scalar_lea.hbm %s697_s0, 16 }
  0x18   : > { %p407_p7 = scmp.ne.s32.totalorder %s405_s30, %s406_s2  ;;  %p413_p11 = scmp.lt.s32.totalorder %s411_s5, %s406_s2 }
  0x1a   : > { %p409_p9 = pnand %p408_p8, %p407_p7 }
  0x1c   : > { %p410_p10 = pneg %p409_p9 }
  0x1e   : > { %p415_p4 = pnand %p413_p11, %p410_p10 }
  0x20   : > { %418 = shalt.err (!%p415_p4)
}
  0x21   : > { %s540_s9 = smov 128   ;;  %s541_s14 = smov 8  }
  0x22   : > { %319 = dma.hbm_to_vmem [thread:$0]  (!%p631_p2), %s119_s26, 256, %s121_s28, [#allocation4], %s540_s9, %s540_s9, %s541_s14  }
  0x23   : > { %p129_p1 = pnand %p303_p3, %p128_p5 }
  0x24   : > { %s134_s15 = sand.u32 (!%p129_p1), 1, %s525_s10  }
  0x25   : > { %132 = sbr.rel (%p129_p1) target bundleno = 71 (0x47), region = 24  ;;  %s304_s17 = sshll.u32 (!%p129_p1), %s134_s15, 4 }
  0x26   : > { %s135_s19 = scalar_lea.sflag (!%p129_p1), [#allocation4], %s134_s15  ;;  %s138_s20 = scalar_lea.vmem (!%p129_p1), [#allocation3], %s304_s17 }
  0x2a   : > { %499 = dma.done.wait (%p602_p6), %s135_s19, 256  }
  0x2b   : > { %501 = vsyncadd (%p602_p6), %s135_s19, 4294967040  ;;  %s306_s24 = sshll.u32 %s529_s11, 4  ;;  %v171_v0 = vlaneseq  ;;  %v167_v6 = vld [vmem:[%s138_s20] sm:$0xff]  ;;  %v168_v7 = vld [vmem:[%s138_s20 + $0x8] sm:$0xff]  ;;  %s155_s18 = sand.u32 1, %s513_s7  }
  0x2c   : > { %v174_v1 = vstv %s306_s24  ;;  %s305_s25 = sshll.u32 %s155_s18, 3  ;;  %s308_s26 = sshll.u32 %s529_s11, 3 }
  0x2d   : > { %v172_v2 = vshrl.u32 %v171_v0, 7  ;;  %s213_s29 = scalar_lea.hbm %s698_s1, %s308_s26  ;;  %s157_s30 = scalar_lea.vmem [#allocation6], %s305_s25 }
  0x2e   : > { %s215_s2 = sshll.u32 %s157_s30, 4  ;;  %s217_s3 = sshll.u32 %s213_s29, 4  ;;  %s216_s2 = int_to_ptr.vmem [resolvable:$true] %s215_s2  ;;  %s218_s3 = int_to_ptr.hbm [resolvable:$true] %s217_s3 }
  0x2f   : > { %v173_v3 = vadd.s32 8, %v172_v2  ;;  %v175_v4 = vadd.s32 %v174_v1, %v172_v2  ;;  %s203_s4 = scalar_lea.sflag [#allocation5], %s155_s18  ;;  %s448_s11 = sshra.s32 %s218_s3, 4  ;;  %s449_s11 = int_to_ptr.hbm [resolvable:$true] %s448_s11 }
  0x30   : > { %s450_s5 = scalar_lea.hbm %s449_s11, 8  ;;  %s454_s15 = scalar_lea.hbm %s698_s1, 16 }
  0x31   : > { %v176_v5 = vadd.s32 %v174_v1, %v173_v3  ;;  %vm177_vm0 = vcmp.lt.s32.totalorder %v175_v4, 16  ;;  %p451_p6 = scmp.ne.s32.totalorder %s449_s11, %s450_s5  ;;  %p455_p5 = scmp.lt.s32.totalorder %s449_s11, %s698_s1 }
  0x32   : > { %v183_v8 = vsel %vm177_vm0, %v167_v6, 0.0  ;;  %p456_p7 = scmp.lt.s32.totalorder %s454_s15, %s450_s5 }
  0x33   : > { %vm178_vm1 = vcmp.lt.s32.totalorder %v176_v5, 16  ;;  %v185_v10 = vadd.f32 1e-12, %v183_v8  ;;  %p452_p2 = pnand %p451_p6, %p616_p12 }
  0x34   : > { %v184_v9 = vsel %vm178_vm1, %v168_v7, 0.0  ;;  %p457_p8 = por %p456_p7, %p455_p5 }
  0x35   : > { %v186_v11 = vadd.f32 1e-12, %v184_v9  ;;  %400 = vlog2.f32 %v185_v10  ;;  %p453_p3 = pneg %p452_p2 }
  0x37   : > { %402 = vlog2.f32 %v186_v11  ;;  %p458_p9 = pnand %p457_p8, %p453_p3 }
  0x3b   : > { %v401_v12 = vpop.eup %400 }
  0x3c   : > { %v188_v14 = vmul.f32 0.6931472, %v401_v12 }
  0x3d   : > { %v403_v13 = vpop.eup %402 }
  0x3e   : > { %v190_v15 = vmul.f32 0.6931472, %v403_v13  ;;  %v191_v16 = vmul.f32 %v188_v14, %v183_v8 }
  0x40   : > { %v192_v17 = vmul.f32 %v190_v15, %v184_v9 }
  0x42   : > { %v194_v18 = vadd.f32 %v192_v17, %v191_v16 }
  0x44   : > { %201 = vst [vmem:[%s157_s30] sm:$0xff] %v194_v18 }
  0x45   : > { %461 = shalt.err (!%p458_p9)
}
  0x46   : > { %314 = dma.vmem_to_hbm [thread:$0]  (%p616_p12), %s216_s2, 128, %s218_s3, %s203_s4  }
  0x47 PF: > { %s229_s20 = sand.u32 1, %s509_s6   ;;  %p321_p10 = pnand %p299_p13, %p621_p0 }
  0x48   : > { %s230_s24 = scalar_lea.sflag [#allocation5], %s229_s20 }
  0x49   : > { %p322_p11 = pneg %p321_p10 }
  0x4b   : > { %503 = dma.done.wait (%p322_p11), %s230_s24, 128  }
  0x4c   : > { %505 = vsyncadd (%p322_p11), %s230_s24, 4294967168  ;;  %s17_s13 = sadd.s32 1, %s537_s13   ;;  %s704_s6 = smov %s513_s7 }
  0x4d   : > { %p14_p4 = scmp.ge.s32.totalorder %s17_s13, 4   ;;  %s705_s7 = smov %s517_s8 }
  0x4e   : > { %s706_s8 = smov %s610_s21  ;;  %s707_s9 = smov %s525_s10 }
  0x4f   : > { %s687_s10 = smov 0   ;;  %s708_s11 = smov %s533_s12 }
  0x50   : > { %s709_s12 = smov %s711_s16  ;;  %16 = sbr.rel (!%p14_p4) target bundleno = 7 (0x7), region = 77 }
  0x55   :  { %236 = vsyncpa [#allocation4], 1 }
  0x56   :  { %238 = vsyncpa [#allocation4 + $0x1], 1 }
  0x57   :  { %239 = vsyncpa [#allocation5], 1 }
  0x58   :  { %241 = vsyncpa [#allocation5 + $0x1], 1 }

</bundles_post_ra>
